<compile_context>
chip_gen: v7x
topology: tpu7x:2x2x1
jax: 0.10.0
libtpu: 0.0.40
codegen_flags: <defaults>
</compile_context>

<pallas_src>
import functools

import jax
import jax.numpy as jnp
from jax import lax
from jax.experimental import pallas as pl
from jax.experimental.pallas import tpu as pltpu


def _down_step_kernel(x_ref, w1_ref, w2_ref, b1_ref, bn_scale_ref, bn_shift_ref,
                      out_ref, *, NB, Hp, Wp, Cin, Cout, compute_dtype):
    # x_ref block: (NB, 2*Hp, Wp, 2*Cin); lane axis holds [w-parity, channel].
    # ---- MaxPool2d(2) (done in-kernel, f32 elementwise for v5e compatibility) ----
    x = x_ref[...].reshape(NB * Hp, 2, Wp, 2 * Cin)      # split H; minor dims untouched
    xh = jnp.maximum(x[:, 0], x[:, 1])                   # reduce row parity -> (NB*Hp, Wp, 2*Cin)
    pooled = jnp.maximum(xh[..., :Cin], xh[..., Cin:])   # reduce col parity -> (NB*Hp, Wp, Cin)

    # ---- flatten to the flat-conv layout: row q = (b*Hp + h)*Wp + w, lanes = channels
    M0 = NB * Hp * Wp
    off_max = 2 * Wp + 2               # largest 3x3 tap offset on the flat grid
    M1 = M0 - off_max                  # rows holding conv1 results (valid + fringe)
    M2 = M1 - off_max                  # rows holding conv2 results
    lhs1 = pooled.reshape(M0, Cin).astype(compute_dtype)

    # ---- Conv1 (3x3, valid) + bias + ReLU : 9 tap matmuls with M = M1 ----
    acc1 = jnp.broadcast_to(b1_ref[...], (M1, Cout))     # bias as accumulator init (f32)
    for t in range(9):                                   # unroll only the 3x3 taps
        off = (t // 3) * Wp + (t % 3)
        acc1 = acc1 + jnp.dot(lhs1[off:off + M1, :], w1_ref[t],
                              preferred_element_type=jnp.float32)
    lhs2 = jnp.maximum(acc1, 0.0).astype(compute_dtype)  # ReLU (Dropout2d == identity, eval)

    # ---- Conv2 (3x3, valid) + folded BatchNorm(+conv2 bias) + ReLU ----
    acc2 = jnp.zeros((M2, Cout), jnp.float32)
    for t in range(9):
        off = (t // 3) * Wp + (t % 3)
        acc2 = acc2 + jnp.dot(lhs2[off:off + M2, :], w2_ref[t],
                              preferred_element_type=jnp.float32)
    z = acc2 * bn_scale_ref[...] + bn_shift_ref[...]     # single fused scale/shift
    out_ref[0] = jnp.maximum(z, 0.0)                     # one slab store


def down_step_pallas(x_nchw, params, *, batch_block=1, compute_dtype=jnp.bfloat16,
                     vmem_limit_bytes=None):
    """Forward pass of downStep (eval mode). Input NCHW, output NCHW (like PyTorch)."""
    w1, b1, w2, b2, gamma, beta, r_mean, r_var, eps = params
    B, Cin, H, W = x_nchw.shape
    Cout = w1.shape[0]
    assert H % 2 == 0 and W % 2 == 0
    Hp, Wp = H // 2, W // 2
    H2, W2 = Hp - 4, Wp - 4
    assert H2 >= 1 and W2 >= 1
    assert B % batch_block == 0
    NB = batch_block
    G = B // NB

    M0 = NB * Hp * Wp
    off_max = 2 * Wp + 2
    M2 = M0 - 2 * off_max

    # ---- host-side layout prep: one NCHW->NHWC transpose (needed for channels-on-lane);
    #      the (W, Cin) -> (Wp, 2*Cin) regroup is a free contiguous reshape.
    x_k = jnp.transpose(x_nchw, (0, 2, 3, 1)).astype(jnp.float32).reshape(B, H, Wp, 2 * Cin)

    # conv weights: OIHW -> (9 taps, Cin, Cout), cast for the MXU
    w1_k = jnp.transpose(w1, (2, 3, 1, 0)).reshape(9, Cin, Cout).astype(compute_dtype)
    w2_k = jnp.transpose(w2, (2, 3, 1, 0)).reshape(9, Cout, Cout).astype(compute_dtype)
    b1_k = b1.reshape(1, Cout).astype(jnp.float32)
    # fold BN (eval: running stats) + conv2 bias: BN(y+b2) = y*scale + ((b2-mean)*scale+beta)
    inv_std = 1.0 / jnp.sqrt(r_var + eps)
    bn_scale = (gamma * inv_std).reshape(1, Cout).astype(jnp.float32)
    bn_shift = (beta + (b2 - r_mean) * gamma * inv_std).reshape(1, Cout).astype(jnp.float32)

    kernel = functools.partial(_down_step_kernel, NB=NB, Hp=Hp, Wp=Wp,
                               Cin=Cin, Cout=Cout, compute_dtype=compute_dtype)

    cp_kwargs = dict(dimension_semantics=("parallel",))
    if vmem_limit_bytes is not None:
        cp_kwargs["vmem_limit_bytes"] = vmem_limit_bytes

    out_flat = pl.pallas_call(
        kernel,
        out_shape=jax.ShapeDtypeStruct((G, M2, Cout), jnp.float32),
        grid_spec=pltpu.PrefetchScalarGridSpec(
            num_scalar_prefetch=0,
            grid=(G,),
            in_specs=[
                pl.BlockSpec((NB, H, Wp, 2 * Cin), lambda g: (g, 0, 0, 0)),
                pl.BlockSpec((9, Cin, Cout), lambda g: (0, 0, 0)),
                pl.BlockSpec((9, Cout, Cout), lambda g: (0, 0, 0)),
                pl.BlockSpec((1, Cout), lambda g: (0, 0)),
                pl.BlockSpec((1, Cout), lambda g: (0, 0)),
                pl.BlockSpec((1, Cout), lambda g: (0, 0)),
            ],
            out_specs=pl.BlockSpec((1, M2, Cout), lambda g: (g, 0, 0)),
        ),
        compiler_params=pltpu.CompilerParams(**cp_kwargs),
    )(x_k, w1_k, w2_k, b1_k, bn_scale, bn_shift)

    # ---- host-side extraction of the valid window from the flat layout, back to NCHW
    out_pad = jnp.pad(out_flat, ((0, 0), (0, M0 - M2), (0, 0)))
    out_nhwc = out_pad.reshape(B, Hp, Wp, Cout)[:, :H2, :W2, :]
    return jnp.transpose(out_nhwc, (0, 3, 1, 2))


def down_step_reference(x_nchw, params):
    """Plain-JAX reference (eval-mode semantics) for validation."""
    w1, b1, w2, b2, gamma, beta, r_mean, r_var, eps = params
    B, C, H, W = x_nchw.shape
    x = x_nchw.reshape(B, C, H // 2, 2, W // 2, 2).max(axis=(3, 5))
    dn = ("NCHW", "OIHW", "NCHW")
    y = lax.conv_general_dilated(x, w1, (1, 1), "VALID", dimension_numbers=dn)
    y = jnp.maximum(y + b1[None, :, None, None], 0.0)
    y = lax.conv_general_dilated(y, w2, (1, 1), "VALID", dimension_numbers=dn)
    y = y + b2[None, :, None, None]
    y = (y - r_mean[None, :, None, None]) / jnp.sqrt(r_var + eps)[None, :, None, None]
    y = y * gamma[None, :, None, None] + beta[None, :, None, None]
    return jnp.maximum(y, 0.0)


def init_params(key, in_channel, out_channel):
    ks = jax.random.split(key, 8)
    k1 = 1.0 / jnp.sqrt(in_channel * 9.0)
    k2 = 1.0 / jnp.sqrt(out_channel * 9.0)
    w1 = jax.random.uniform(ks[0], (out_channel, in_channel, 3, 3), jnp.float32, -k1, k1)
    b1 = jax.random.uniform(ks[1], (out_channel,), jnp.float32, -k1, k1)
    w2 = jax.random.uniform(ks[2], (out_channel, out_channel, 3, 3), jnp.float32, -k2, k2)
    b2 = jax.random.uniform(ks[3], (out_channel,), jnp.float32, -k2, k2)
    gamma = 1.0 + 0.1 * jax.random.normal(ks[4], (out_channel,), jnp.float32)
    beta = 0.1 * jax.random.normal(ks[5], (out_channel,), jnp.float32)
    r_mean = 0.05 * jax.random.normal(ks[6], (out_channel,), jnp.float32)
    r_var = 1.0 + 0.1 * jax.random.uniform(ks[7], (out_channel,), jnp.float32)
    eps = jnp.float32(1e-5)
    return (w1, b1, w2, b2, gamma, beta, r_mean, r_var, eps)


if __name__ == "__main__":
    key = jax.random.PRNGKey(0)
    k_x, k_p = jax.random.split(key)

    B, Cin, H, W = 2, 4, 16, 16
    Cout = 8
    x = jax.random.normal(k_x, (B, Cin, H, W), jnp.float32)
    params = init_params(k_p, Cin, Cout)

    ref = jax.block_until_ready(down_step_reference(x, params))

    # f32 matmul operands, one batch per grid step (parallel axis -> both v7x TCs).
    f32_per_batch = jax.jit(functools.partial(down_step_pallas, batch_block=1,
                                              compute_dtype=jnp.float32))
    out = jax.block_until_ready(f32_per_batch(x, params))
    assert out.shape == ref.shape == (B, Cout, H // 2 - 4, W // 2 - 4)
    err = float(jnp.max(jnp.abs(out - ref)))
    assert jnp.allclose(out, ref, atol=1e-4, rtol=1e-4), err

    # whole batch folded into one grid step (larger M per matmul, fewer grid steps).
    f32_folded = jax.jit(functools.partial(down_step_pallas, batch_block=B,
                                           compute_dtype=jnp.float32))
    out2 = jax.block_until_ready(f32_folded(x, params))
    err2 = float(jnp.max(jnp.abs(out2 - ref)))
    assert jnp.allclose(out2, ref, atol=1e-4, rtol=1e-4), err2

    # bf16 MXU operands with f32 accumulation (v6e/v7x fast path).
    bf16_folded = jax.jit(functools.partial(down_step_pallas, batch_block=B,
                                            compute_dtype=jnp.bfloat16))
    out3 = jax.block_until_ready(bf16_folded(x, params))
    err3 = float(jnp.max(jnp.abs(out3 - ref)))
    assert jnp.allclose(out3, ref, atol=5e-2, rtol=5e-2), err3

    print("KERNEL_OK")
</pallas_src>

<mosaic_0001>
module attributes {stable_mosaic.version = 11 : i64} {
  func.func @_down_step_kernel(%arg0: i32, %arg1: memref<1x16x8x8xf32, #tpu.memory_space<vmem>>, %arg2: memref<9x4x8xf32, #tpu.memory_space<vmem>>, %arg3: memref<9x8x8xf32, #tpu.memory_space<vmem>>, %arg4: memref<1x8xf32, #tpu.memory_space<vmem>>, %arg5: memref<1x8xf32, #tpu.memory_space<vmem>>, %arg6: memref<1x8xf32, #tpu.memory_space<vmem>>, %arg7: memref<1x28x8xf32, #tpu.memory_space<vmem>>) attributes {dimension_semantics = [#tpu.dimension_semantics<parallel>], iteration_bounds = array<i64: 2>, scalar_prefetch = 0 : i64, scratch_operands = 0 : i64, tpu.core_type = #tpu.core_type<tc>, window_params = [{transform_indices = @transform_0, window_bounds = array<i64: 1, 16, 8, 8>}, {pipeline_mode = #tpu.pipeline_mode<synchronous>, transform_indices = @transform_1, window_bounds = array<i64: 9, 4, 8>}, {pipeline_mode = #tpu.pipeline_mode<synchronous>, transform_indices = @transform_2, window_bounds = array<i64: 9, 8, 8>}, {pipeline_mode = #tpu.pipeline_mode<synchronous>, transform_indices = @transform_3, window_bounds = array<i64: 1, 8>}, {pipeline_mode = #tpu.pipeline_mode<synchronous>, transform_indices = @transform_4, window_bounds = array<i64: 1, 8>}, {pipeline_mode = #tpu.pipeline_mode<synchronous>, transform_indices = @transform_5, window_bounds = array<i64: 1, 8>}, {transform_indices = @transform_6, window_bounds = array<i64: 1, 28, 8>}]} {
    %c0 = arith.constant 0 : index
    %c0_0 = arith.constant 0 : index
    %c0_1 = arith.constant 0 : index
    %c0_2 = arith.constant 0 : index
    %0 = vector.load %arg1[%c0, %c0_0, %c0_1, %c0_2] : memref<1x16x8x8xf32, #tpu.memory_space<vmem>>, vector<1x16x8x8xf32>
    %1 = vector.shape_cast %0 : vector<1x16x8x8xf32> to vector<8x2x8x8xf32>
    %2 = vector.extract_strided_slice %1 {offsets = [0, 0, 0, 0], sizes = [8, 1, 8, 8], strides = [1, 1, 1, 1]} : vector<8x2x8x8xf32> to vector<8x1x8x8xf32>
    %3 = vector.shape_cast %2 : vector<8x1x8x8xf32> to vector<8x8x8xf32>
    %4 = vector.extract_strided_slice %1 {offsets = [0, 1, 0, 0], sizes = [8, 1, 8, 8], strides = [1, 1, 1, 1]} : vector<8x2x8x8xf32> to vector<8x1x8x8xf32>
    %5 = vector.shape_cast %4 : vector<8x1x8x8xf32> to vector<8x8x8xf32>
    %6 = arith.maximumf %3, %5 : vector<8x8x8xf32>
    %7 = vector.extract_strided_slice %6 {offsets = [0, 0, 0], sizes = [8, 8, 4], strides = [1, 1, 1]} : vector<8x8x8xf32> to vector<8x8x4xf32>
    %8 = vector.extract_strided_slice %6 {offsets = [0, 0, 4], sizes = [8, 8, 4], strides = [1, 1, 1]} : vector<8x8x8xf32> to vector<8x8x4xf32>
    %9 = arith.maximumf %7, %8 : vector<8x8x4xf32>
    %10 = vector.shape_cast %9 : vector<8x8x4xf32> to vector<64x4xf32>
    %c0_3 = arith.constant 0 : index
    %c0_4 = arith.constant 0 : index
    %11 = vector.load %arg4[%c0_3, %c0_4] : memref<1x8xf32, #tpu.memory_space<vmem>>, vector<1x8xf32>
    %12 = vector.shape_cast %11 : vector<1x8xf32> to vector<1x8xf32>
    %13 = vector.broadcast %12 : vector<1x8xf32> to vector<46x8xf32>
    %14 = vector.extract_strided_slice %10 {offsets = [0, 0], sizes = [46, 4], strides = [1, 1]} : vector<64x4xf32> to vector<46x4xf32>
    %c0_5 = arith.constant 0 : index
    %c0_6 = arith.constant 0 : index
    %c0_7 = arith.constant 0 : index
    %15 = vector.load %arg2[%c0_5, %c0_6, %c0_7] : memref<9x4x8xf32, #tpu.memory_space<vmem>>, vector<1x4x8xf32>
    %16 = vector.shape_cast %15 : vector<1x4x8xf32> to vector<4x8xf32>
    %cst = arith.constant dense<0.000000e+00> : vector<46x8xf32>
    %17 = tpu.matmul %14, %16, %cst {dimension_numbers = #tpu.dot_dimension_numbers<[1], [0], [0], [1], [0, 0, 1, 1], [], []>} : vector<46x4xf32>, vector<4x8xf32>, vector<46x8xf32> -> vector<46x8xf32>
    %18 = arith.addf %13, %17 : vector<46x8xf32>
    %19 = vector.extract_strided_slice %10 {offsets = [1, 0], sizes = [46, 4], strides = [1, 1]} : vector<64x4xf32> to vector<46x4xf32>
    %c1 = arith.constant 1 : index
    %c0_8 = arith.constant 0 : index
    %c0_9 = arith.constant 0 : index
    %20 = vector.load %arg2[%c1, %c0_8, %c0_9] : memref<9x4x8xf32, #tpu.memory_space<vmem>>, vector<1x4x8xf32>
    %21 = vector.shape_cast %20 : vector<1x4x8xf32> to vector<4x8xf32>
    %cst_10 = arith.constant dense<0.000000e+00> : vector<46x8xf32>
    %22 = tpu.matmul %19, %21, %cst_10 {dimension_numbers = #tpu.dot_dimension_numbers<[1], [0], [0], [1], [0, 0, 1, 1], [], []>} : vector<46x4xf32>, vector<4x8xf32>, vector<46x8xf32> -> vector<46x8xf32>
    %23 = arith.addf %18, %22 : vector<46x8xf32>
    %24 = vector.extract_strided_slice %10 {offsets = [2, 0], sizes = [46, 4], strides = [1, 1]} : vector<64x4xf32> to vector<46x4xf32>
    %c2 = arith.constant 2 : index
    %c0_11 = arith.constant 0 : index
    %c0_12 = arith.constant 0 : index
    %25 = vector.load %arg2[%c2, %c0_11, %c0_12] : memref<9x4x8xf32, #tpu.memory_space<vmem>>, vector<1x4x8xf32>
    %26 = vector.shape_cast %25 : vector<1x4x8xf32> to vector<4x8xf32>
    %cst_13 = arith.constant dense<0.000000e+00> : vector<46x8xf32>
    %27 = tpu.matmul %24, %26, %cst_13 {dimension_numbers = #tpu.dot_dimension_numbers<[1], [0], [0], [1], [0, 0, 1, 1], [], []>} : vector<46x4xf32>, vector<4x8xf32>, vector<46x8xf32> -> vector<46x8xf32>
    %28 = arith.addf %23, %27 : vector<46x8xf32>
    %29 = vector.extract_strided_slice %10 {offsets = [8, 0], sizes = [46, 4], strides = [1, 1]} : vector<64x4xf32> to vector<46x4xf32>
    %c3 = arith.constant 3 : index
    %c0_14 = arith.constant 0 : index
    %c0_15 = arith.constant 0 : index
    %30 = vector.load %arg2[%c3, %c0_14, %c0_15] : memref<9x4x8xf32, #tpu.memory_space<vmem>>, vector<1x4x8xf32>
    %31 = vector.shape_cast %30 : vector<1x4x8xf32> to vector<4x8xf32>
    %cst_16 = arith.constant dense<0.000000e+00> : vector<46x8xf32>
    %32 = tpu.matmul %29, %31, %cst_16 {dimension_numbers = #tpu.dot_dimension_numbers<[1], [0], [0], [1], [0, 0, 1, 1], [], []>} : vector<46x4xf32>, vector<4x8xf32>, vector<46x8xf32> -> vector<46x8xf32>
    %33 = arith.addf %28, %32 : vector<46x8xf32>
    %34 = vector.extract_strided_slice %10 {offsets = [9, 0], sizes = [46, 4], strides = [1, 1]} : vector<64x4xf32> to vector<46x4xf32>
    %c4 = arith.constant 4 : index
    %c0_17 = arith.constant 0 : index
    %c0_18 = arith.constant 0 : index
    %35 = vector.load %arg2[%c4, %c0_17, %c0_18] : memref<9x4x8xf32, #tpu.memory_space<vmem>>, vector<1x4x8xf32>
    %36 = vector.shape_cast %35 : vector<1x4x8xf32> to vector<4x8xf32>
    %cst_19 = arith.constant dense<0.000000e+00> : vector<46x8xf32>
    %37 = tpu.matmul %34, %36, %cst_19 {dimension_numbers = #tpu.dot_dimension_numbers<[1], [0], [0], [1], [0, 0, 1, 1], [], []>} : vector<46x4xf32>, vector<4x8xf32>, vector<46x8xf32> -> vector<46x8xf32>
    %38 = arith.addf %33, %37 : vector<46x8xf32>
    %39 = vector.extract_strided_slice %10 {offsets = [10, 0], sizes = [46, 4], strides = [1, 1]} : vector<64x4xf32> to vector<46x4xf32>
    %c5 = arith.constant 5 : index
    %c0_20 = arith.constant 0 : index
    %c0_21 = arith.constant 0 : index
    %40 = vector.load %arg2[%c5, %c0_20, %c0_21] : memref<9x4x8xf32, #tpu.memory_space<vmem>>, vector<1x4x8xf32>
    %41 = vector.shape_cast %40 : vector<1x4x8xf32> to vector<4x8xf32>
    %cst_22 = arith.constant dense<0.000000e+00> : vector<46x8xf32>
    %42 = tpu.matmul %39, %41, %cst_22 {dimension_numbers = #tpu.dot_dimension_numbers<[1], [0], [0], [1], [0, 0, 1, 1], [], []>} : vector<46x4xf32>, vector<4x8xf32>, vector<46x8xf32> -> vector<46x8xf32>
    %43 = arith.addf %38, %42 : vector<46x8xf32>
    %44 = vector.extract_strided_slice %10 {offsets = [16, 0], sizes = [46, 4], strides = [1, 1]} : vector<64x4xf32> to vector<46x4xf32>
    %c6 = arith.constant 6 : index
    %c0_23 = arith.constant 0 : index
    %c0_24 = arith.constant 0 : index
    %45 = vector.load %arg2[%c6, %c0_23, %c0_24] : memref<9x4x8xf32, #tpu.memory_space<vmem>>, vector<1x4x8xf32>
    %46 = vector.shape_cast %45 : vector<1x4x8xf32> to vector<4x8xf32>
    %cst_25 = arith.constant dense<0.000000e+00> : vector<46x8xf32>
    %47 = tpu.matmul %44, %46, %cst_25 {dimension_numbers = #tpu.dot_dimension_numbers<[1], [0], [0], [1], [0, 0, 1, 1], [], []>} : vector<46x4xf32>, vector<4x8xf32>, vector<46x8xf32> -> vector<46x8xf32>
    %48 = arith.addf %43, %47 : vector<46x8xf32>
    %49 = vector.extract_strided_slice %10 {offsets = [17, 0], sizes = [46, 4], strides = [1, 1]} : vector<64x4xf32> to vector<46x4xf32>
    %c7 = arith.constant 7 : index
    %c0_26 = arith.constant 0 : index
    %c0_27 = arith.constant 0 : index
    %50 = vector.load %arg2[%c7, %c0_26, %c0_27] : memref<9x4x8xf32, #tpu.memory_space<vmem>>, vector<1x4x8xf32>
    %51 = vector.shape_cast %50 : vector<1x4x8xf32> to vector<4x8xf32>
    %cst_28 = arith.constant dense<0.000000e+00> : vector<46x8xf32>
    %52 = tpu.matmul %49, %51, %cst_28 {dimension_numbers = #tpu.dot_dimension_numbers<[1], [0], [0], [1], [0, 0, 1, 1], [], []>} : vector<46x4xf32>, vector<4x8xf32>, vector<46x8xf32> -> vector<46x8xf32>
    %53 = arith.addf %48, %52 : vector<46x8xf32>
    %54 = vector.extract_strided_slice %10 {offsets = [18, 0], sizes = [46, 4], strides = [1, 1]} : vector<64x4xf32> to vector<46x4xf32>
    %c8 = arith.constant 8 : index
    %c0_29 = arith.constant 0 : index
    %c0_30 = arith.constant 0 : index
    %55 = vector.load %arg2[%c8, %c0_29, %c0_30] : memref<9x4x8xf32, #tpu.memory_space<vmem>>, vector<1x4x8xf32>
    %56 = vector.shape_cast %55 : vector<1x4x8xf32> to vector<4x8xf32>
    %cst_31 = arith.constant dense<0.000000e+00> : vector<46x8xf32>
    %57 = tpu.matmul %54, %56, %cst_31 {dimension_numbers = #tpu.dot_dimension_numbers<[1], [0], [0], [1], [0, 0, 1, 1], [], []>} : vector<46x4xf32>, vector<4x8xf32>, vector<46x8xf32> -> vector<46x8xf32>
    %58 = arith.addf %53, %57 : vector<46x8xf32>
    %cst_32 = arith.constant 0.000000e+00 : f32
    %59 = vector.broadcast %cst_32 : f32 to vector<46x8xf32>
    %60 = arith.maximumf %58, %59 : vector<46x8xf32>
    %cst_33 = arith.constant 0.000000e+00 : f32
    %61 = vector.broadcast %cst_33 : f32 to vector<28x8xf32>
    %62 = vector.extract_strided_slice %60 {offsets = [0, 0], sizes = [28, 8], strides = [1, 1]} : vector<46x8xf32> to vector<28x8xf32>
    %c0_34 = arith.constant 0 : index
    %c0_35 = arith.constant 0 : index
    %c0_36 = arith.constant 0 : index
    %63 = vector.load %arg3[%c0_34, %c0_35, %c0_36] : memref<9x8x8xf32, #tpu.memory_space<vmem>>, vector<1x8x8xf32>
    %64 = vector.shape_cast %63 : vector<1x8x8xf32> to vector<8x8xf32>
    %cst_37 = arith.constant dense<0.000000e+00> : vector<28x8xf32>
    %65 = tpu.matmul %62, %64, %cst_37 {dimension_numbers = #tpu.dot_dimension_numbers<[1], [0], [0], [1], [0, 0, 1, 1], [], []>} : vector<28x8xf32>, vector<8x8xf32>, vector<28x8xf32> -> vector<28x8xf32>
    %66 = arith.addf %61, %65 : vector<28x8xf32>
    %67 = vector.extract_strided_slice %60 {offsets = [1, 0], sizes = [28, 8], strides = [1, 1]} : vector<46x8xf32> to vector<28x8xf32>
    %c1_38 = arith.constant 1 : index
    %c0_39 = arith.constant 0 : index
    %c0_40 = arith.constant 0 : index
    %68 = vector.load %arg3[%c1_38, %c0_39, %c0_40] : memref<9x8x8xf32, #tpu.memory_space<vmem>>, vector<1x8x8xf32>
    %69 = vector.shape_cast %68 : vector<1x8x8xf32> to vector<8x8xf32>
    %cst_41 = arith.constant dense<0.000000e+00> : vector<28x8xf32>
    %70 = tpu.matmul %67, %69, %cst_41 {dimension_numbers = #tpu.dot_dimension_numbers<[1], [0], [0], [1], [0, 0, 1, 1], [], []>} : vector<28x8xf32>, vector<8x8xf32>, vector<28x8xf32> -> vector<28x8xf32>
    %71 = arith.addf %66, %70 : vector<28x8xf32>
    %72 = vector.extract_strided_slice %60 {offsets = [2, 0], sizes = [28, 8], strides = [1, 1]} : vector<46x8xf32> to vector<28x8xf32>
    %c2_42 = arith.constant 2 : index
    %c0_43 = arith.constant 0 : index
    %c0_44 = arith.constant 0 : index
    %73 = vector.load %arg3[%c2_42, %c0_43, %c0_44] : memref<9x8x8xf32, #tpu.memory_space<vmem>>, vector<1x8x8xf32>
    %74 = vector.shape_cast %73 : vector<1x8x8xf32> to vector<8x8xf32>
    %cst_45 = arith.constant dense<0.000000e+00> : vector<28x8xf32>
    %75 = tpu.matmul %72, %74, %cst_45 {dimension_numbers = #tpu.dot_dimension_numbers<[1], [0], [0], [1], [0, 0, 1, 1], [], []>} : vector<28x8xf32>, vector<8x8xf32>, vector<28x8xf32> -> vector<28x8xf32>
    %76 = arith.addf %71, %75 : vector<28x8xf32>
    %77 = vector.extract_strided_slice %60 {offsets = [8, 0], sizes = [28, 8], strides = [1, 1]} : vector<46x8xf32> to vector<28x8xf32>
    %c3_46 = arith.constant 3 : index
    %c0_47 = arith.constant 0 : index
    %c0_48 = arith.constant 0 : index
    %78 = vector.load %arg3[%c3_46, %c0_47, %c0_48] : memref<9x8x8xf32, #tpu.memory_space<vmem>>, vector<1x8x8xf32>
    %79 = vector.shape_cast %78 : vector<1x8x8xf32> to vector<8x8xf32>
    %cst_49 = arith.constant dense<0.000000e+00> : vector<28x8xf32>
    %80 = tpu.matmul %77, %79, %cst_49 {dimension_numbers = #tpu.dot_dimension_numbers<[1], [0], [0], [1], [0, 0, 1, 1], [], []>} : vector<28x8xf32>, vector<8x8xf32>, vector<28x8xf32> -> vector<28x8xf32>
    %81 = arith.addf %76, %80 : vector<28x8xf32>
    %82 = vector.extract_strided_slice %60 {offsets = [9, 0], sizes = [28, 8], strides = [1, 1]} : vector<46x8xf32> to vector<28x8xf32>
    %c4_50 = arith.constant 4 : index
    %c0_51 = arith.constant 0 : index
    %c0_52 = arith.constant 0 : index
    %83 = vector.load %arg3[%c4_50, %c0_51, %c0_52] : memref<9x8x8xf32, #tpu.memory_space<vmem>>, vector<1x8x8xf32>
    %84 = vector.shape_cast %83 : vector<1x8x8xf32> to vector<8x8xf32>
    %cst_53 = arith.constant dense<0.000000e+00> : vector<28x8xf32>
    %85 = tpu.matmul %82, %84, %cst_53 {dimension_numbers = #tpu.dot_dimension_numbers<[1], [0], [0], [1], [0, 0, 1, 1], [], []>} : vector<28x8xf32>, vector<8x8xf32>, vector<28x8xf32> -> vector<28x8xf32>
    %86 = arith.addf %81, %85 : vector<28x8xf32>
    %87 = vector.extract_strided_slice %60 {offsets = [10, 0], sizes = [28, 8], strides = [1, 1]} : vector<46x8xf32> to vector<28x8xf32>
    %c5_54 = arith.constant 5 : index
    %c0_55 = arith.constant 0 : index
    %c0_56 = arith.constant 0 : index
    %88 = vector.load %arg3[%c5_54, %c0_55, %c0_56] : memref<9x8x8xf32, #tpu.memory_space<vmem>>, vector<1x8x8xf32>
    %89 = vector.shape_cast %88 : vector<1x8x8xf32> to vector<8x8xf32>
    %cst_57 = arith.constant dense<0.000000e+00> : vector<28x8xf32>
    %90 = tpu.matmul %87, %89, %cst_57 {dimension_numbers = #tpu.dot_dimension_numbers<[1], [0], [0], [1], [0, 0, 1, 1], [], []>} : vector<28x8xf32>, vector<8x8xf32>, vector<28x8xf32> -> vector<28x8xf32>
    %91 = arith.addf %86, %90 : vector<28x8xf32>
    %92 = vector.extract_strided_slice %60 {offsets = [16, 0], sizes = [28, 8], strides = [1, 1]} : vector<46x8xf32> to vector<28x8xf32>
    %c6_58 = arith.constant 6 : index
    %c0_59 = arith.constant 0 : index
    %c0_60 = arith.constant 0 : index
    %93 = vector.load %arg3[%c6_58, %c0_59, %c0_60] : memref<9x8x8xf32, #tpu.memory_space<vmem>>, vector<1x8x8xf32>
    %94 = vector.shape_cast %93 : vector<1x8x8xf32> to vector<8x8xf32>
    %cst_61 = arith.constant dense<0.000000e+00> : vector<28x8xf32>
    %95 = tpu.matmul %92, %94, %cst_61 {dimension_numbers = #tpu.dot_dimension_numbers<[1], [0], [0], [1], [0, 0, 1, 1], [], []>} : vector<28x8xf32>, vector<8x8xf32>, vector<28x8xf32> -> vector<28x8xf32>
    %96 = arith.addf %91, %95 : vector<28x8xf32>
    %97 = vector.extract_strided_slice %60 {offsets = [17, 0], sizes = [28, 8], strides = [1, 1]} : vector<46x8xf32> to vector<28x8xf32>
    %c7_62 = arith.constant 7 : index
    %c0_63 = arith.constant 0 : index
    %c0_64 = arith.constant 0 : index
    %98 = vector.load %arg3[%c7_62, %c0_63, %c0_64] : memref<9x8x8xf32, #tpu.memory_space<vmem>>, vector<1x8x8xf32>
    %99 = vector.shape_cast %98 : vector<1x8x8xf32> to vector<8x8xf32>
    %cst_65 = arith.constant dense<0.000000e+00> : vector<28x8xf32>
    %100 = tpu.matmul %97, %99, %cst_65 {dimension_numbers = #tpu.dot_dimension_numbers<[1], [0], [0], [1], [0, 0, 1, 1], [], []>} : vector<28x8xf32>, vector<8x8xf32>, vector<28x8xf32> -> vector<28x8xf32>
    %101 = arith.addf %96, %100 : vector<28x8xf32>
    %102 = vector.extract_strided_slice %60 {offsets = [18, 0], sizes = [28, 8], strides = [1, 1]} : vector<46x8xf32> to vector<28x8xf32>
    %c8_66 = arith.constant 8 : index
    %c0_67 = arith.constant 0 : index
    %c0_68 = arith.constant 0 : index
    %103 = vector.load %arg3[%c8_66, %c0_67, %c0_68] : memref<9x8x8xf32, #tpu.memory_space<vmem>>, vector<1x8x8xf32>
    %104 = vector.shape_cast %103 : vector<1x8x8xf32> to vector<8x8xf32>
    %cst_69 = arith.constant dense<0.000000e+00> : vector<28x8xf32>
    %105 = tpu.matmul %102, %104, %cst_69 {dimension_numbers = #tpu.dot_dimension_numbers<[1], [0], [0], [1], [0, 0, 1, 1], [], []>} : vector<28x8xf32>, vector<8x8xf32>, vector<28x8xf32> -> vector<28x8xf32>
    %106 = arith.addf %101, %105 : vector<28x8xf32>
    %c0_70 = arith.constant 0 : index
    %c0_71 = arith.constant 0 : index
    %107 = vector.load %arg5[%c0_70, %c0_71] : memref<1x8xf32, #tpu.memory_space<vmem>>, vector<1x8xf32>
    %108 = vector.broadcast %107 : vector<1x8xf32> to vector<28x8xf32>
    %109 = arith.mulf %106, %108 : vector<28x8xf32>
    %c0_72 = arith.constant 0 : index
    %c0_73 = arith.constant 0 : index
    %110 = vector.load %arg6[%c0_72, %c0_73] : memref<1x8xf32, #tpu.memory_space<vmem>>, vector<1x8xf32>
    %111 = vector.broadcast %110 : vector<1x8xf32> to vector<28x8xf32>
    %112 = arith.addf %109, %111 : vector<28x8xf32>
    %cst_74 = arith.constant 0.000000e+00 : f32
    %113 = vector.broadcast %cst_74 : f32 to vector<28x8xf32>
    %114 = arith.maximumf %112, %113 : vector<28x8xf32>
    %c0_75 = arith.constant 0 : index
    %c0_76 = arith.constant 0 : index
    %c0_77 = arith.constant 0 : index
    %115 = vector.load %arg7[%c0_75, %c0_76, %c0_77] : memref<1x28x8xf32, #tpu.memory_space<vmem>>, vector<1x28x8xf32>
    %116 = vector.shape_cast %115 : vector<1x28x8xf32> to vector<28x8xf32>
    %117 = vector.shape_cast %114 : vector<28x8xf32> to vector<1x28x8xf32>
    tpu.vector_store %arg7[%c0_75, %c0_76, %c0_77], %117 {strides = array<i32>} : memref<1x28x8xf32, #tpu.memory_space<vmem>>, vector<1x28x8xf32>,
    return
  }
  func.func @transform_0(%arg0: i32) -> (i32, i32, i32, i32) {
    %c0_i32 = arith.constant 0 : i32
    %c0_i32_0 = arith.constant 0 : i32
    %c0_i32_1 = arith.constant 0 : i32
    %c0_i32_2 = arith.constant 0 : i32
    return %arg0, %c0_i32, %c0_i32_0, %c0_i32_1 : i32, i32, i32, i32
  }
  func.func @transform_1(%arg0: i32) -> (i32, i32, i32) {
    %c0_i32 = arith.constant 0 : i32
    %c0_i32_0 = arith.constant 0 : i32
    %c0_i32_1 = arith.constant 0 : i32
    %c0_i32_2 = arith.constant 0 : i32
    return %c0_i32, %c0_i32_0, %c0_i32_1 : i32, i32, i32
  }
  func.func @transform_2(%arg0: i32) -> (i32, i32, i32) {
    %c0_i32 = arith.constant 0 : i32
    %c0_i32_0 = arith.constant 0 : i32
    %c0_i32_1 = arith.constant 0 : i32
    %c0_i32_2 = arith.constant 0 : i32
    return %c0_i32, %c0_i32_0, %c0_i32_1 : i32, i32, i32
  }
  func.func @transform_3(%arg0: i32) -> (i32, i32) {
    %c0_i32 = arith.constant 0 : i32
    %c0_i32_0 = arith.constant 0 : i32
    %c0_i32_1 = arith.constant 0 : i32
    return %c0_i32, %c0_i32_0 : i32, i32
  }
  func.func @transform_4(%arg0: i32) -> (i32, i32) {
    %c0_i32 = arith.constant 0 : i32
    %c0_i32_0 = arith.constant 0 : i32
    %c0_i32_1 = arith.constant 0 : i32
    return %c0_i32, %c0_i32_0 : i32, i32
  }
  func.func @transform_5(%arg0: i32) -> (i32, i32) {
    %c0_i32 = arith.constant 0 : i32
    %c0_i32_0 = arith.constant 0 : i32
    %c0_i32_1 = arith.constant 0 : i32
    return %c0_i32, %c0_i32_0 : i32, i32
  }
  func.func @transform_6(%arg0: i32) -> (i32, i32, i32) {
    %c0_i32 = arith.constant 0 : i32
    %c0_i32_0 = arith.constant 0 : i32
    %c0_i32_1 = arith.constant 0 : i32
    return %arg0, %c0_i32, %c0_i32_0 : i32, i32, i32
  }
}

</mosaic_0001>

<bundles_post_ra>
// kernel: down_step_pallas.1
= control target key start
LH: loop header
LB: loop body
LE: loop exit
PB: predicated region body
PF: predicated region fallthrough
CT: control target
= control target key end

     0   :  { %s2900_s21 = smov 0   ;;  %s3209_s0 = inlined_call_operand.vmem [shape: f32[2,16,8,8], index: 0, kind: input, shape index: {}]   ;;  %s3210_s1 = inlined_call_operand.vmem [shape: f32[9,4,8], index: 1, kind: input, shape index: {}]   ;;  %s3211_s2 = inlined_call_operand.vmem [shape: f32[9,8,8], index: 2, kind: input, shape index: {}]   ;;  %s3212_s3 = inlined_call_operand.vmem [shape: f32[1,8], index: 3, kind: input, shape index: {}]   ;;  %s3213_s4 = inlined_call_operand.vmem [shape: f32[1,8], index: 4, kind: input, shape index: {}]   ;;  %s3214_s5 = inlined_call_operand.vmem [shape: f32[1,8], index: 5, kind: input, shape index: {}]   ;;  %s3215_s6 = inlined_call_operand.vmem [shape: f32[2,28,8], index: 6, kind: output, shape index: {}]  }
   0x1 LB: > { %s2349_s22 = sadd.s32 4294967295, %s2862_s21   ;;  %p2353_p0 = scmp.ge.s32.totalorder %s2862_s21, 1  ;;  %s2862_s21 = sphi %s2900_s21, %s16_s21  }
   0x2   : > { %p212_p1 = scmp.lt.s32.totalorder %s2862_s21, 3 }
   0x4   : > { %p213_p2 = pnand %p2353_p0, %p212_p1 }
   0x5   : > { %p242_p3 = scmp.lt.s32.totalorder (!%p213_p2), %s2349_s22, 1  ;;  %v323_v0 = vld [vmem:[%s3210_s1] sm:$0xf] (!%p213_p2)  ;;  %vm343_vm0 = vcmask (!%p213_p2), 1043456   ;;  %v2366_v1 = vld [vmem:[%s3210_s1 + $0x4] sm:$0xf] (!%p213_p2) }
   0x6   : > { %216 = sbr.rel (%p213_p2) target bundleno = 736 (0x2e0), region = 44  ;;  %2588 = vmatprep.subr.msk.mxu1 (!%p213_p2), %vm343_vm0, %v323_v0  ;;  %2599 = vmatprep.subr.msk.mxu0 (!%p213_p2), %vm343_vm0, %v2366_v1  ;;  %v2928_v2 = vld [vmem:[%s3210_s1 + $0x8] sm:$0xf] (!%p213_p2)  ;;  %s2864_s9 = smov (!%p213_p2), 124   ;;  %vm324_vm1 = vcmask (!%p213_p2), 31744   ;;  %vm450_vm2 = vcmask (!%p213_p2), 1046528  }
   0x7   : > { %2589 = vmatpush3.msk.msra.mxu1 (!%p213_p2), %vm343_vm0, %v323_v0  ;;  %2600 = vmatpush3.msk.msra.mxu0 (!%p213_p2), %vm343_vm0, %v2366_v1  ;;  %vm580_vm3 = vcmask (!%p213_p2), 1045504   ;;  %v2382_v45 = vld [vmem:[%s3210_s1 + $0xc] sm:$0xf] (!%p213_p2)  ;;  %v2390_v59 = vld [vmem:[%s3210_s1 + $0x10] sm:$0xf] (!%p213_p2)  ;;  %vm1394_vm4 = vcmask (!%p213_p2), 64512  }
   0x8   : > { %2759 = vmatprep.subr.msk.mxu1 (!%p213_p2), %vm343_vm0, %v2366_v1  ;;  %2610 = vmatprep.subr.msk.mxu0 (!%p213_p2), %vm343_vm0, %v2928_v2  ;;  %v2398_v63 = vld [vmem:[%s3210_s1 + $0x14] sm:$0xf] (!%p213_p2)  ;;  %vm2292_vm5 = vcmask (!%p213_p2), 60416  }
   0xd   : > { %s3217_s22 = smov (!%p242_p3, %s2349_s22), 1 }
   0xe   : > { %s2478_s27 = sshll.u32 %s3217_s22, 7  ;;  %s2479_s26 = sshll.u32 %s3217_s22, 5 }
   0xf   : > { %s246_s30 = scalar_lea.vmem %s3209_s0, %s2478_s27  ;;  %s251_s29 = scalar_lea.vmem %s3215_s6, %s2479_s26 }
  0x10   : > { %v252_v3 = vld [vmem:[%s246_s30] sm:$0xff]  ;;  %v253_v4 = vld [vmem:[%s246_s30 + $0x8] sm:$0xff]  ;;  %v254_v8 = vld [vmem:[%s246_s30 + $0x10] sm:$0xff] }
  0x11   : > { %v256_v5 = vld [vmem:[%s246_s30 + $0x20] sm:$0xff]  ;;  %v268_v6 = vmax.f32 %v252_v3, %v253_v4  ;;  %v257_v7 = vld [vmem:[%s246_s30 + $0x28] sm:$0xff]  ;;  %v255_v9 = vld [vmem:[%s246_s30 + $0x18] sm:$0xff] }
  0x12   : > { %v270_v10 = vmax.f32 %v256_v5, %v257_v7  ;;  %v258_v11 = vld [vmem:[%s246_s30 + $0x30] sm:$0xff]  ;;  %v259_v12 = vld [vmem:[%s246_s30 + $0x38] sm:$0xff]  ;;  %v269_v13 = vmax.f32 %v254_v8, %v255_v9  ;;  %v260_v15 = vld [vmem:[%s246_s30 + $0x40] sm:$0xff] }
  0x13   : > { %284 = vrot.lane.b32.xlu0 %v268_v6, %s2864_s9  ;;  %v271_v14 = vmax.f32 %v258_v11, %v259_v12  ;;  %v261_v16 = vld [vmem:[%s246_s30 + $0x48] sm:$0xff]  ;;  %v262_v17 = vld [vmem:[%s246_s30 + $0x50] sm:$0xff]  ;;  %v263_v18 = vld [vmem:[%s246_s30 + $0x58] sm:$0xff] }
  0x14   : > { %288 = vrot.lane.b32.xlu1 %v270_v10, %s2864_s9  ;;  %v272_v19 = vmax.f32 %v260_v15, %v261_v16  ;;  %v273_v20 = vmax.f32 %v262_v17, %v263_v18  ;;  %v264_v21 = vld [vmem:[%s246_s30 + $0x60] sm:$0xff]  ;;  %v265_v22 = vld [vmem:[%s246_s30 + $0x68] sm:$0xff]  ;;  %v266_v23 = vld [vmem:[%s246_s30 + $0x70] sm:$0xff] }
  0x15   : > { %v267_v24 = vld [vmem:[%s246_s30 + $0x78] sm:$0xff]  ;;  %v2932_v25 = vmax.f32 %v264_v21, %v265_v22  ;;  %v2422_v8 = vld [vmem:[%s3210_s1 + $0x20] sm:$0xf]  ;;  %v2430_v15 = vld [vmem:[%s3211_s2 + $0x8] sm:$0xff] }
  0x16   : > { %v2934_v26 = vmax.f32 %v266_v23, %v267_v24  ;;  %v2414_v5 = vld [vmem:[%s3210_s1 + $0x1c] sm:$0xf]  ;;  %v1380_v16 = vld [vmem:[%s3211_s2] sm:$0xff] }
  0x17   : > { %286 = vrot.lane.b32.xlu0 %v269_v13, %s2864_s9  ;;  %v2358_v23 = vld [vmem:[%s3212_s3] ss:$0 sm:$0xff] }
  0x18   : > { %290 = vrot.lane.b32.xlu1 %v271_v14, %s2864_s9 }
  0x1b   : > { %292 = vrot.lane.b32.xlu0 %v272_v19, %s2864_s9 }
  0x1c   : > { %294 = vrot.lane.b32.xlu1 %v273_v20, %s2864_s9 }
  0x1f   : > { %296 = vrot.lane.b32.xlu0 %v2932_v25, %s2864_s9 }
  0x20   : > { %298 = vrot.lane.b32.xlu1 %v2934_v26, %s2864_s9 }
  0x85   : > { %v285_v27 = vpop.permute.xlu0 %284 }
  0x86   : > { %v308_v28 = vmax.f32 %v268_v6, %v285_v27  ;;  %v289_v29 = vpop.permute.xlu1 %288 }
  0x87   : > { %v2938_v30 = vmax.f32 %v270_v10, %v289_v29 }
  0x88   : > { %2590 = vmatprep.mubr.msk.f32.mxu1 %vm324_vm1, %v308_v28  ;;  %v451_v36 = vrot.slane %v308_v28, 1  ;;  %v581_v40 = vrot.slane %v308_v28, 2 }
  0x89   : > { %v287_v31 = vpop.permute.xlu0 %286  ;;  %v454_v34 = vrot.slane %v2938_v30, 1  ;;  %v584_v50 = vrot.slane %v2938_v30, 2 }
  0x8a   : > { %v309_v32 = vmax.f32 %v269_v13, %v287_v31  ;;  %v291_v33 = vpop.permute.xlu1 %290 }
  0x8b   : > { %v2942_v35 = vmax.f32 %v271_v14, %v291_v33 }
  0x8c   : > { %2591 = vmatmul.mubr.msk.f32.vlgmr.msra.gmra.mrb[0].mxu1 %vm324_vm1, %v309_v32  ;;  %v452_v37 = vrot.slane %v309_v32, 1  ;;  %v582_v38 = vrot.slane %v309_v32, 2 }
  0x8d   : > { %2593 = vmatprep.mubr.msk.f32.mxu1 %vm324_vm1, %v2938_v30  ;;  %v293_v39 = vpop.permute.xlu0 %292  ;;  %2760 = vmatpush3.msk.msra.mxu1 %vm343_vm0, %v2366_v1  ;;  %v456_v48 = vrot.slane %v2942_v35, 1  ;;  %v586_v53 = vrot.slane %v2942_v35, 2 }
  0x8e   : > { %v453_v41 = vsel %vm450_vm2, %v451_v36, %v452_v37  ;;  %v455_v42 = vsel %vm450_vm2, %v452_v37, %v454_v34  ;;  %v2950_v43 = vmax.f32 %v272_v19, %v293_v39  ;;  %v295_v44 = vpop.permute.xlu1 %294  ;;  %v583_v47 = vsel %vm580_vm3, %v581_v40, %v582_v38  ;;  %2687 = vmatprep.subr.mxu1 %v2430_v15 }
  0x8f   : > { %2601 = vmatprep.mubr.msk.f32.mxu0 %vm324_vm1, %v453_v41  ;;  %v2959_v46 = vmax.f32 %v273_v20, %v295_v44  ;;  %v2975_v52 = vsel %vm450_vm2, %v454_v34, %v456_v48  ;;  %v585_v57 = vsel %vm580_vm3, %v582_v38, %v584_v50  ;;  %v2996_v60 = vsel %vm580_vm3, %v584_v50, %v586_v53 }
  0x90   : > { %2594 = vmatmul.mubr.msk.f32.gmra.mrb[2].mxu1 %vm324_vm1, %v2942_v35  ;;  %2602 = vmatmul.mubr.msk.f32.vlgmr.msra.gmra.mrb[0].mxu0 %vm324_vm1, %v455_v42  ;;  %v458_v49 = vrot.slane %v2950_v43, 1  ;;  %v588_v55 = vrot.slane %v2950_v43, 2 }
  0x91   : > { %2611 = vmatpush3.msk.msra.mxu0 %vm343_vm0, %v2928_v2  ;;  %2612 = vmatprep.mubr.msk.f32.mxu0 %vm324_vm1, %v583_v47  ;;  %v460_v51 = vrot.slane %v2959_v46, 1  ;;  %v590_v56 = vrot.slane %v2959_v46, 2  ;;  %v297_v0 = vpop.permute.xlu0 %296  ;;  %v2406_v2 = vld [vmem:[%s3210_s1 + $0x18] sm:$0xf] }
  0x92   : > { %2596 = vmatprep.mubr.msk.f32.mxu1 %vm324_vm1, %v2950_v43  ;;  %2621 = vmatprep.subr.msk.mxu0 %vm343_vm0, %v2382_v45  ;;  %v2981_v54 = vsel %vm450_vm2, %v456_v48, %v458_v49  ;;  %v3002_v61 = vsel %vm580_vm3, %v586_v53, %v588_v55  ;;  %v314_v1 = vmax.f32 %v2932_v25, %v297_v0  ;;  %v299_v9 = vpop.permute.xlu1 %298 }
  0x93   : > { %v2987_v58 = vsel %vm450_vm2, %v458_v49, %v460_v51  ;;  %v591_v62 = vsel %vm580_vm3, %v588_v55, %v590_v56  ;;  %v315_v10 = vmax.f32 %v2934_v26, %v299_v9  ;;  %v2454_v9 = vld [vmem:[%s3211_s2 + $0x28] sm:$0xff] }
  0x94   : > { %2597 = vmatmul.mubr.msk.f32.gmra.mrb[4].mxu1 %vm324_vm1, %v2959_v46  ;;  %v819_v3 = vrot.slane %v314_v1, 1  ;;  %v931_v6 = vrot.slane %v314_v1, 2 }
  0x95   : > { %2604 = vmatprep.mubr.msk.f32.mxu1 %vm324_vm1, %v2975_v52  ;;  %v1152_v11 = vrot.slane %v315_v10, 1  ;;  %v1264_v13 = vrot.slane %v315_v10, 2 }
  0x96   : > { %v820_v4 = vsel %vm450_vm2, %v460_v51, %v819_v3  ;;  %v932_v7 = vsel %vm580_vm3, %v590_v56, %v931_v6 }
  0x97   : > { %v1153_v12 = vsel %vm450_vm2, %v819_v3, %v1152_v11  ;;  %v1265_v14 = vsel %vm580_vm3, %v931_v6, %v1264_v13 }
  0x98   : > { %2605 = vmatmul.mubr.msk.f32.vlgmr.msra.gmra.mrb[2].mxu1 %vm324_vm1, %v2981_v54  ;;  %2613 = vmatmul.mubr.msk.f32.vlgmr.msra.gmra.mrb[0].mxu0 %vm324_vm1, %v585_v57 }
  0x99   : > { %2622 = vmatpush3.msk.msra.mxu0 %vm343_vm0, %v2382_v45  ;;  %2615 = vmatprep.mubr.msk.f32.mxu0 %vm324_vm1, %v2996_v60 }
  0x9a   : > { %2607 = vmatprep.mubr.msk.f32.mxu1 %vm324_vm1, %v2987_v58  ;;  %2632 = vmatprep.subr.msk.mxu0 %vm343_vm0, %v2390_v59 }
  0x9b   : > { %2688 = vmatpush3.msra.mxu1 %v2430_v15  ;;  %v2475_v15 = vld [vmem:[%s3214_s5] ss:$0 sm:$0xff] }
  0x9c   : > { %2608 = vmatmul.mubr.msk.f32.gmra.mrb[4].mxu1 %vm324_vm1, %v460_v51  ;;  %2616 = vmatmul.mubr.msk.f32.gmra.mrb[2].mxu0 %vm324_vm1, %v3002_v61 }
  0x9d   : > { %2618 = vmatprep.mubr.msk.f32.mxu0 %vm324_vm1, %v591_v62  ;;  %2695 = vmatprep.subr.mxu1 %v1380_v16 }
  0xa0   : > { %2619 = vmatmul.mubr.msk.f32.gmra.mrb[4].mxu0 %vm324_vm1, %v590_v56 }
  0xa1   : > { %2623 = vmatprep.mubr.msk.f32.mxu0 %vm324_vm1, %v309_v32 }
  0xa4   : > { %2624 = vmatmul.mubr.msk.f32.vlgmr.msra.gmra.mrb[0].mxu0 %vm324_vm1, %v2938_v30 }
  0xa5   : > { %2633 = vmatpush3.msk.msra.mxu0 %vm343_vm0, %v2390_v59  ;;  %2626 = vmatprep.mubr.msk.f32.mxu0 %vm324_vm1, %v2942_v35 }
  0xa6   : > { %2643 = vmatprep.subr.msk.mxu0 %vm343_vm0, %v2398_v63 }
  0xa8   : > { %2627 = vmatmul.mubr.msk.f32.gmra.mrb[2].mxu0 %vm324_vm1, %v2950_v43 }
  0xa9   : > { %2629 = vmatprep.mubr.msk.f32.mxu0 %vm324_vm1, %v2959_v46 }
  0xac   : > { %2630 = vmatmul.mubr.msk.f32.gmra.mrb[4].mxu0 %vm324_vm1, %v314_v1 }
  0xad   : > { %2634 = vmatprep.mubr.msk.f32.mxu0 %vm324_vm1, %v455_v42 }
  0xb0   : > { %2635 = vmatmul.mubr.msk.f32.vlgmr.msra.gmra.mrb[0].mxu0 %vm324_vm1, %v2975_v52 }
  0xb1   : > { %2644 = vmatpush3.msk.msra.mxu0 %vm343_vm0, %v2398_v63  ;;  %2637 = vmatprep.mubr.msk.f32.mxu0 %vm324_vm1, %v2981_v54 }
  0xb2   : > { %2654 = vmatprep.subr.msk.mxu0 %vm343_vm0, %v2406_v2 }
  0xb4   : > { %2638 = vmatmul.mubr.msk.f32.gmra.mrb[2].mxu0 %vm324_vm1, %v2987_v58 }
  0xb5   : > { %2640 = vmatprep.mubr.msk.f32.mxu0 %vm324_vm1, %v820_v4 }
  0xb8   : > { %2641 = vmatmul.mubr.msk.f32.gmra.mrb[4].mxu0 %vm324_vm1, %v819_v3 }
  0xb9   : > { %2645 = vmatprep.mubr.msk.f32.mxu0 %vm324_vm1, %v585_v57 }
  0xbc   : > { %2646 = vmatmul.mubr.msk.f32.vlgmr.msra.gmra.mrb[0].mxu0 %vm324_vm1, %v2996_v60 }
  0xbd   : > { %2655 = vmatpush3.msk.msra.mxu0 %vm343_vm0, %v2406_v2  ;;  %2648 = vmatprep.mubr.msk.f32.mxu0 %vm324_vm1, %v3002_v61 }
  0xbe   : > { %2665 = vmatprep.subr.msk.mxu0 %vm343_vm0, %v2414_v5 }
  0xc0   : > { %2649 = vmatmul.mubr.msk.f32.gmra.mrb[2].mxu0 %vm324_vm1, %v591_v62 }
  0xc1   : > { %2651 = vmatprep.mubr.msk.f32.mxu0 %vm324_vm1, %v932_v7 }
  0xc4   : > { %2652 = vmatmul.mubr.msk.f32.gmra.mrb[4].mxu0 %vm324_vm1, %v931_v6 }
  0xc5   : > { %2656 = vmatprep.mubr.msk.f32.mxu0 %vm324_vm1, %v2938_v30 }
  0xc8   : > { %2657 = vmatmul.mubr.msk.f32.vlgmr.msra.gmra.mrb[0].mxu0 %vm324_vm1, %v2942_v35 }
  0xc9   : > { %2666 = vmatpush3.msk.msra.mxu0 %vm343_vm0, %v2414_v5  ;;  %2659 = vmatprep.mubr.msk.f32.mxu0 %vm324_vm1, %v2950_v43 }
  0xca   : > { %2676 = vmatprep.subr.msk.mxu0 %vm343_vm0, %v2422_v8 }
  0xcc   : > { %2660 = vmatmul.mubr.msk.f32.gmra.mrb[2].mxu0 %vm324_vm1, %v2959_v46 }
  0xcd   : > { %2662 = vmatprep.mubr.msk.f32.mxu0 %vm324_vm1, %v314_v1 }
  0xd0   : > { %2663 = vmatmul.mubr.msk.f32.gmra.mrb[4].mxu0 %vm324_vm1, %v315_v10  ;;  %v2459_v10 = vld [vmem:[%s3211_s2 + $0x30] sm:$0xff] }
  0xd1   : > { %2667 = vmatprep.mubr.msk.f32.mxu0 %vm324_vm1, %v2975_v52 }
  0xd4   : > { %2668 = vmatmul.mubr.msk.f32.vlgmr.msra.gmra.mrb[0].mxu0 %vm324_vm1, %v2981_v54 }
  0xd5   : > { %2677 = vmatpush3.msk.msra.mxu0 %vm343_vm0, %v2422_v8  ;;  %2670 = vmatprep.mubr.msk.f32.mxu0 %vm324_vm1, %v2987_v58  ;;  %v2449_v8 = vld [vmem:[%s3211_s2 + $0x20] sm:$0xff] }
  0xd8   : > { %2671 = vmatmul.mubr.msk.f32.gmra.mrb[2].mxu0 %vm324_vm1, %v820_v4 }
  0xd9   : > { %2673 = vmatprep.mubr.msk.f32.mxu0 %vm324_vm1, %v1153_v12  ;;  %v2469_v12 = vld [vmem:[%s3211_s2 + $0x40] sm:$0xff] }
  0xdc   : > { %2674 = vmatmul.mubr.msk.f32.gmra.mrb[4].mxu0 %vm324_vm1, %v1152_v11  ;;  %v2464_v11 = vld [vmem:[%s3211_s2 + $0x38] sm:$0xff] }
  0xdd   : > { %2678 = vmatprep.mubr.msk.f32.mxu0 %vm324_vm1, %v2996_v60  ;;  %v2439_v60 = vld [vmem:[%s3211_s2 + $0x10] sm:$0xff] }
  0xe0   : > { %2679 = vmatmul.mubr.msk.f32.vlgmr.msra.gmra.mrb[0].mxu0 %vm324_vm1, %v3002_v61 }
  0xe1   : > { %2681 = vmatprep.mubr.msk.f32.mxu0 %vm324_vm1, %v591_v62 }
  0xe4   : > { %2682 = vmatmul.mubr.msk.f32.gmra.mrb[2].mxu0 %vm324_vm1, %v932_v7  ;;  %v2444_v7 = vld [vmem:[%s3211_s2 + $0x18] sm:$0xff] }
  0xe5   : > { %2684 = vmatprep.mubr.msk.f32.mxu0 %vm324_vm1, %v1265_v14 }
  0xe8   : > { %2685 = vmatmul.mubr.msk.f32.gmra.mrb[4].mxu0 %vm324_vm1, %v1264_v13  ;;  %v2474_v13 = vld [vmem:[%s3213_s4] ss:$0 sm:$0xff] }
 0x15f   : > { %v2592_v17 = vpop.f32.mrb[0].mxu1 }
 0x160   : > { %v413_v18 = vpop.f32.mrb[1].mxu1  ;;  %v443_v24 = vadd.f32 %v2592_v17, %v2358_v23 }
 0x161   : > { %v442_v25 = vadd.f32 %v2358_v23, %v413_v18 }
 0x16b   : > { %v2606_v19 = vpop.f32.mrb[2].mxu1 }
 0x16c   : > { %v553_v20 = vpop.f32.mrb[3].mxu1  ;;  %v2765_v30 = vadd.f32 %v2606_v19, %v2358_v23 }
 0x16d   : > { %v2767_v32 = vadd.f32 %v2358_v23, %v553_v20 }
 0x16f   : > { %v2609_v21 = vpop.f32.mrb[4].mxu1 }
 0x170   : > { %v563_v22 = vpop.f32.mrb[5].mxu1  ;;  %v2769_v42 = vadd.f32 %v2609_v21, %v2358_v23 }
 0x171   : > { %v2771_v44 = vadd.f32 %v2358_v23, %v563_v22 }
 0x1b3   : > { %v2680_v26 = vpop.f32.mrb[0].mxu0 }
 0x1b4   : > { %v2762_v27 = vadd.f32 %v2680_v26, %v443_v24  ;;  %v1339_v28 = vpop.f32.mrb[1].mxu0 }
 0x1b5   : > { %v2764_v29 = vadd.f32 %v1339_v28, %v442_v25 }
 0x1b6   : > { %v1375_v31 = vmax.f32 %v2762_v27, 0.0 }
 0x1b7   : > { %v1374_v33 = vmax.f32 %v2764_v29, 0.0  ;;  %v2683_v34 = vpop.f32.mrb[2].mxu0 }
 0x1b8   : > { %v2766_v35 = vadd.f32 %v2765_v30, %v2683_v34  ;;  %v1349_v36 = vpop.f32.mrb[3].mxu0  ;;  %v1388_v37 = vrot.slane %v1375_v31, 1  ;;  %v1584_v38 = vrot.slane %v1375_v31, 2 }
 0x1b9   : > { %v1387_v39 = vrot.slane %v1374_v33, 1  ;;  %v1583_v40 = vrot.slane %v1374_v33, 2  ;;  %v2768_v41 = vadd.f32 %v2767_v32, %v1349_v36 }
 0x1ba   : > { %v3103_v43 = vmax.f32 %v2766_v35, 0.0 }
 0x1bb   : > { %v3105_v45 = vmax.f32 %v2768_v41, 0.0  ;;  %v2686_v46 = vpop.f32.mrb[4].mxu0  ;;  %v1389_v47 = vsel %vm450_vm2, %v1387_v39, %v1388_v37  ;;  %v1585_v48 = vsel %vm580_vm3, %v1583_v40, %v1584_v38 }
 0x1bc   : > { %v2770_v49 = vadd.f32 %v2769_v42, %v2686_v46  ;;  %v1359_v50 = vpop.f32.mrb[5].mxu0  ;;  %2689 = vmatprep.mubr.msk.f32.mxu1 %vm1394_vm4, %v1389_v47  ;;  %v1392_v51 = vrot.slane %v3103_v43, 1  ;;  %v1588_v52 = vrot.slane %v3103_v43, 2 }
 0x1bd   : > { %v2772_v53 = vadd.f32 %v2771_v44, %v1359_v50  ;;  %v1390_v54 = vrot.slane %v3105_v45, 1  ;;  %v1586_v55 = vrot.slane %v3105_v45, 2 }
 0x1be   : > { %v3114_v56 = vmax.f32 %v2770_v49, 0.0 }
 0x1bf   : > { %v1378_v57 = vmax.f32 %v2772_v53, 0.0  ;;  %v1391_v58 = vsel %vm450_vm2, %v1388_v37, %v1390_v54  ;;  %v1393_v59 = vsel %vm450_vm2, %v1390_v54, %v1392_v51  ;;  %v1587_v61 = vsel %vm580_vm3, %v1584_v38, %v1586_v55 }
 0x1c0   : > { %v2071_v62 = vrot.slane %v3114_v56, 1  ;;  %v2168_v63 = vrot.slane %v3114_v56, 2  ;;  %2690 = vmatmul.mubr.msk.f32.vlgmr.msra.gmra.mrb[6].mxu1 %vm1394_vm4, %v1391_v58  ;;  %v1589_v0 = vsel %vm580_vm3, %v1586_v55, %v1588_v52 }
 0x1c1   : > { %2696 = vmatpush3.msra.mxu1 %v1380_v16  ;;  %2692 = vmatprep.mubr.msk.f32.mxu1 %vm1394_vm4, %v1393_v59  ;;  %v1783_v1 = vrot.slane %v1378_v57, 1  ;;  %v1880_v2 = vrot.slane %v1378_v57, 2 }
 0x1c2   : > { %2703 = vmatprep.subr.mxu1 %v2439_v60 }
 0x1c3   : > { %v1784_v3 = vsel %vm450_vm2, %v1392_v51, %v1783_v1  ;;  %v1881_v4 = vsel %vm580_vm3, %v1588_v52, %v1880_v2  ;;  %v2072_v5 = vsel %vm450_vm2, %v1783_v1, %v2071_v62  ;;  %v2169_v6 = vsel %vm580_vm3, %v1880_v2, %v2168_v63 }
 0x1c4   : > { %2693 = vmatmul.mubr.msk.f32.gmra.mrb[8].mxu1 %vm1394_vm4, %v1392_v51 }
 0x1c5   : > { %2697 = vmatprep.mubr.msk.f32.mxu1 %vm1394_vm4, %v1374_v33 }
 0x1c8   : > { %2698 = vmatmul.mubr.msk.f32.vlgmr.msra.gmra.mrb[6].mxu1 %vm1394_vm4, %v1375_v31 }
 0x1c9   : > { %2704 = vmatpush3.msra.mxu1 %v2439_v60  ;;  %2700 = vmatprep.mubr.msk.f32.mxu1 %vm1394_vm4, %v3105_v45 }
 0x1ca   : > { %2711 = vmatprep.subr.mxu1 %v2444_v7 }
 0x1cc   : > { %2701 = vmatmul.mubr.msk.f32.gmra.mrb[8].mxu1 %vm1394_vm4, %v3103_v43 }
 0x1cd   : > { %2705 = vmatprep.mubr.msk.f32.mxu1 %vm1394_vm4, %v1585_v48 }
 0x1d0   : > { %2706 = vmatmul.mubr.msk.f32.vlgmr.msra.gmra.mrb[6].mxu1 %vm1394_vm4, %v1587_v61 }
 0x1d1   : > { %2712 = vmatpush3.msra.mxu1 %v2444_v7  ;;  %2708 = vmatprep.mubr.msk.f32.mxu1 %vm1394_vm4, %v1589_v0 }
 0x1d2   : > { %2719 = vmatprep.subr.mxu1 %v2449_v8 }
 0x1d4   : > { %2709 = vmatmul.mubr.msk.f32.gmra.mrb[8].mxu1 %vm1394_vm4, %v1588_v52 }
 0x1d5   : > { %2713 = vmatprep.mubr.msk.f32.mxu1 %vm1394_vm4, %v1375_v31 }
 0x1d8   : > { %2714 = vmatmul.mubr.msk.f32.vlgmr.msra.gmra.mrb[6].mxu1 %vm1394_vm4, %v3105_v45 }
 0x1d9   : > { %2720 = vmatpush3.msra.mxu1 %v2449_v8  ;;  %2716 = vmatprep.mubr.msk.f32.mxu1 %vm1394_vm4, %v3103_v43 }
 0x1da   : > { %2727 = vmatprep.subr.mxu1 %v2454_v9 }
 0x1dc   : > { %2717 = vmatmul.mubr.msk.f32.gmra.mrb[8].mxu1 %vm1394_vm4, %v1378_v57 }
 0x1dd   : > { %2721 = vmatprep.mubr.msk.f32.mxu1 %vm1394_vm4, %v1391_v58 }
 0x1e0   : > { %2722 = vmatmul.mubr.msk.f32.vlgmr.msra.gmra.mrb[6].mxu1 %vm1394_vm4, %v1393_v59 }
 0x1e1   : > { %2728 = vmatpush3.msra.mxu1 %v2454_v9  ;;  %2724 = vmatprep.mubr.msk.f32.mxu1 %vm1394_vm4, %v1784_v3 }
 0x1e2   : > { %2735 = vmatprep.subr.mxu1 %v2459_v10 }
 0x1e4   : > { %2725 = vmatmul.mubr.msk.f32.gmra.mrb[8].mxu1 %vm1394_vm4, %v1783_v1 }
 0x1e5   : > { %2729 = vmatprep.mubr.msk.f32.mxu1 %vm1394_vm4, %v1587_v61 }
 0x1e8   : > { %2730 = vmatmul.mubr.msk.f32.vlgmr.msra.gmra.mrb[6].mxu1 %vm1394_vm4, %v1589_v0 }
 0x1e9   : > { %2736 = vmatpush3.msra.mxu1 %v2459_v10  ;;  %2732 = vmatprep.mubr.msk.f32.mxu1 %vm1394_vm4, %v1881_v4 }
 0x1ea   : > { %2743 = vmatprep.subr.mxu1 %v2464_v11 }
 0x1ec   : > { %2733 = vmatmul.mubr.msk.f32.gmra.mrb[8].mxu1 %vm1394_vm4, %v1880_v2 }
 0x1ed   : > { %2737 = vmatprep.mubr.msk.f32.mxu1 %vm1394_vm4, %v3105_v45 }
 0x1f0   : > { %2738 = vmatmul.mubr.msk.f32.vlgmr.msra.gmra.mrb[6].mxu1 %vm1394_vm4, %v3103_v43 }
 0x1f1   : > { %2744 = vmatpush3.msra.mxu1 %v2464_v11  ;;  %2740 = vmatprep.mubr.msk.f32.mxu1 %vm1394_vm4, %v1378_v57 }
 0x1f2   : > { %2751 = vmatprep.subr.mxu1 %v2469_v12 }
 0x1f4   : > { %2741 = vmatmul.mubr.msk.f32.gmra.mrb[8].mxu1 %vm1394_vm4, %v3114_v56 }
 0x1f5   : > { %2745 = vmatprep.mubr.msk.f32.mxu1 %vm1394_vm4, %v1393_v59 }
 0x1f8   : > { %2746 = vmatmul.mubr.msk.f32.vlgmr.msra.gmra.mrb[6].mxu1 %vm1394_vm4, %v1784_v3 }
 0x1f9   : > { %2752 = vmatpush3.msra.mxu1 %v2469_v12  ;;  %2748 = vmatprep.mubr.msk.f32.mxu1 %vm1394_vm4, %v2072_v5 }
 0x1fc   : > { %2749 = vmatmul.mubr.msk.f32.gmra.mrb[8].mxu1 %vm1394_vm4, %v2071_v62 }
 0x1fd   : > { %2753 = vmatprep.mubr.msk.f32.mxu1 %vm1394_vm4, %v1589_v0 }
 0x200   : > { %2754 = vmatmul.mubr.msk.f32.vlgmr.msra.gmra.mrb[6].mxu1 %vm1394_vm4, %v1881_v4 }
 0x201   : > { %2756 = vmatprep.mubr.msk.f32.mxu1 %vm1394_vm4, %v2169_v6 }
 0x204   : > { %2757 = vmatmul.mubr.msk.f32.gmra.mrb[8].mxu1 %vm1394_vm4, %v2168_v63 }
 0x2d3   : > { %v2755_v14 = vpop.f32.mrb[6].mxu1 }
 0x2d4   : > { %v2271_v16 = vmul.f32 %v2755_v14, %v2474_v13  ;;  %v2240_v17 = vpop.f32.mrb[7].mxu1 }
 0x2d5   : > { %v2270_v18 = vmul.f32 %v2474_v13, %v2240_v17 }
 0x2d6   : > { %v2282_v19 = vadd.f32 %v2475_v15, %v2271_v16 }
 0x2d7   : > { %v2281_v20 = vadd.f32 %v2475_v15, %v2270_v18  ;;  %v2758_v21 = vpop.f32.mrb[8].mxu1 }
 0x2d8   : > { %v2286_v22 = vmax.f32 %v2282_v19, 0.0  ;;  %v2273_v23 = vmul.f32 %v2758_v21, %v2474_v13  ;;  %v2250_v24 = vpop.f32.mrb[9].mxu1 }
 0x2d9   : > { %v2285_v25 = vmax.f32 %v2281_v20, 0.0  ;;  %v2272_v26 = vmul.f32 %v2474_v13, %v2250_v24 }
 0x2da   : > { %2290 = vst.msk [vmem:[%s251_s29 + $0x8] sm:$0xff] %vm1394_vm4, %v2286_v22  ;;  %v2284_v27 = vadd.f32 %v2475_v15, %v2273_v23 }
 0x2db   : > { %2289 = vst.msk [vmem:[%s251_s29] sm:$0xff] %vm1394_vm4, %v2285_v25  ;;  %v2283_v28 = vadd.f32 %v2475_v15, %v2272_v26 }
 0x2dc   : > { %v2288_v29 = vmax.f32 %v2284_v27, 0.0 }
 0x2dd   : > { %v2287_v30 = vmax.f32 %v2283_v28, 0.0 }
 0x2de   : > { %2293 = vst.msk [vmem:[%s251_s29 + $0x18] sm:$0xf] %vm2292_vm5, %v2288_v29 }
 0x2df   : > { %2291 = vst.msk [vmem:[%s251_s29 + $0x10] sm:$0xff] %vm1394_vm4, %v2287_v30 }
 0x2e0 PF: > { %s16_s21 = sadd.s32 1, %s2862_s21  }
 0x2e1   : > { %p13_p4 = scmp.ge.s32.totalorder %s16_s21, 4  }
 0x2e3   :  { %15 = sbr.rel (!%p13_p4) target bundleno = 1 (0x1), region = 90 }

</bundles_post_ra>
